<compile_context>
chip_gen: v7x
topology: tpu7x:2x2x1
jax: 0.10.0
libtpu: 0.0.40
codegen_flags: <defaults>
</compile_context>

<pallas_src>
import math

import jax
import jax.numpy as jnp
from jax.experimental import pallas as pl
from jax.experimental.pallas import tpu as pltpu


def _round_up(x, m):
    return ((x + m - 1) // m) * m


def _freq_bands(n_embd):
    num_ff = n_embd // 2
    return (2.0 ** jnp.linspace(0.0, math.log2(num_ff) - 1.0, num_ff)).astype(jnp.float32)


def _make_kernel(r):
    """Kernel for one (tile, W) output slab, W = r * n_embd.

    pos_ref  : (tile, r)      r packed position columns
    const_ref: (r+1, W)       rows 0..r-1: block-diagonal freq masks, row r: phase
    out_ref  : (tile, W)      sin(pos * freq + phase)  ==  [sin | cos] packed
    """
    def kernel(pos_ref, const_ref, out_ref):
        p = pos_ref[...]                          # (tile, r)
        c = const_ref[...]                        # (r+1, W)
        ang = c[r:r + 1, :]                       # phase row, broadcasts over rows
        for j in range(r):                        # r exact VPU broadcast-FMAs
            ang = ang + p[:, j:j + 1] * c[j:j + 1, :]
        # Single transcendental per element (EUP); full-width lane-dense store.
        out_ref[...] = jnp.sin(ang).astype(out_ref.dtype)
    return kernel


def _choose_tile_rows(rows, width_lanes, target_bytes):
    """Rows per grid step for a (rows, width) f32 output block."""
    bytes_per_row = 4 * width_lanes
    t = max(8, (target_bytes // bytes_per_row) // 8 * 8)
    rows8 = _round_up(max(rows, 1), 8)
    t = min(t, rows8)
    # Prefer >= 2 grid steps when there is enough work (v7x dual-TensorCore).
    if t >= rows8 >= 16:
        t = _round_up(rows8 // 2, 8)
    return t


def fourier_feature_embeddings(positions, n_embd, *, out_dtype=jnp.float32,
                               target_block_bytes=2 << 20):
    """positions: (T,) float/int array -> (T, n_embd) fourier features."""
    T = positions.shape[0]
    num_ff = n_embd // 2
    assert n_embd % 2 == 0 and num_ff >= 1

    # Lane-packing factor: pack r logical rows per physical output row so the
    # stored block is 128 lanes wide when n_embd < 128 (unmasked full stores).
    if n_embd < 128 and 128 % n_embd == 0:
        r = min(128 // n_embd, 16)
    else:
        r = 1
    W = r * n_embd

    # Host constants: [freq, freq] per group + phase ([0]*num_ff + [pi/2]*num_ff).
    freq2 = jnp.concatenate([_freq_bands(n_embd)] * 2)                      # (n_embd,)
    phase2 = jnp.concatenate([jnp.zeros((num_ff,), jnp.float32),
                              jnp.full((num_ff,), math.pi / 2.0, dtype=jnp.float32)])
    freq_rows = jnp.kron(jnp.eye(r, dtype=jnp.float32), freq2[None, :])     # (r, W)
    const = jnp.concatenate([freq_rows, jnp.tile(phase2, (r,))[None, :]], 0)  # (r+1, W)

    rows = -(-T // r)                                   # packed rows needed
    tile = _choose_tile_rows(rows, W, target_block_bytes)
    rows_pad = _round_up(max(rows, 1), tile)
    grid = rows_pad // tile
    T_pad = rows_pad * r

    pos_pack = jnp.pad(positions.astype(jnp.float32),
                       (0, T_pad - T)).reshape(rows_pad, r)

    # Scoped-VMEM budget: double-buffered in/out blocks + constant + headroom.
    needed = 2 * (tile * W * 4 + tile * r * 4) + (r + 1) * W * 4
    vmem_limit = int(min(max(2 * needed, 16 << 20), 48 << 20))

    out = pl.pallas_call(
        _make_kernel(r),
        out_shape=jax.ShapeDtypeStruct((rows_pad, W), out_dtype),
        grid_spec=pltpu.PrefetchScalarGridSpec(
            num_scalar_prefetch=0,
            grid=(grid,),
            in_specs=[
                pl.BlockSpec((tile, r), lambda i: (i, 0)),
                pl.BlockSpec((r + 1, W), lambda i: (0, 0)),   # hoisted constant
            ],
            out_specs=pl.BlockSpec((tile, W), lambda i: (i, 0)),
        ),
        compiler_params=pltpu.CompilerParams(
            dimension_semantics=("parallel",),
            vmem_limit_bytes=vmem_limit,
        ),
    )(pos_pack, const)

    # Row-major (rows_pad, r*n_embd) and (rows_pad*r, n_embd) are the same
    # buffer: this reshape is free.
    return out.reshape(rows_pad * r, n_embd)[:T]


def _reference(positions, n_embd):
    """Pure-JAX replica of the PyTorch forward."""
    freq = _freq_bands(n_embd)
    ang = positions.astype(jnp.float32)[:, None] * freq[None, :]
    return jnp.concatenate([jnp.sin(ang), jnp.cos(ang)], axis=-1)


if __name__ == "__main__":
    key = jax.random.PRNGKey(0)
    n_embd = 32
    max_seq_len = 16

    # Main small example: seq_len = 8 (packed path, r = 4).
    seq_len = 8
    positions = jax.random.uniform(
        key, (seq_len,), dtype=jnp.float32, minval=0.0, maxval=float(max_seq_len)
    )
    out = jax.block_until_ready(fourier_feature_embeddings(positions, n_embd))
    ref = _reference(positions, n_embd)
    assert out.shape == (seq_len, n_embd)
    assert jnp.allclose(out, ref, atol=1e-3, rtol=1e-3), "mismatch vs reference (T=8)"

    # Pad/pack path: T not a multiple of r.
    seq_len2 = 13
    positions2 = jnp.arange(seq_len2, dtype=jnp.float32)
    out2 = jax.block_until_ready(fourier_feature_embeddings(positions2, n_embd))
    ref2 = _reference(positions2, n_embd)
    assert out2.shape == (seq_len2, n_embd)
    assert jnp.allclose(out2, ref2, atol=1e-3, rtol=1e-3), "mismatch vs reference (T=13)"

    # Multi-step grid + r=2 packing.
    seq_len3, n_embd3 = 300, 64
    positions3 = jax.random.uniform(jax.random.PRNGKey(1), (seq_len3,),
                                    dtype=jnp.float32, minval=0.0, maxval=16.0)
    out3 = jax.block_until_ready(fourier_feature_embeddings(positions3, n_embd3))
    ref3 = _reference(positions3, n_embd3)
    assert out3.shape == (seq_len3, n_embd3)
    assert jnp.allclose(out3, ref3, atol=1e-3, rtol=1e-3), "mismatch vs reference (T=300)"

    # r = 1 fallback (already lane dense at n_embd = 128).
    seq_len4, n_embd4 = 20, 128
    positions4 = jax.random.uniform(jax.random.PRNGKey(2), (seq_len4,),
                                    dtype=jnp.float32, minval=0.0, maxval=16.0)
    out4 = jax.block_until_ready(fourier_feature_embeddings(positions4, n_embd4))
    ref4 = _reference(positions4, n_embd4)
    assert out4.shape == (seq_len4, n_embd4)
    assert jnp.allclose(out4, ref4, atol=1e-3, rtol=1e-3), "mismatch vs reference (T=20)"

    print("KERNEL_OK")
</pallas_src>

<mosaic_0001>
module attributes {stable_mosaic.version = 11 : i64} {
  func.func @kernel(%arg0: i32, %arg1: memref<8x4xf32, #tpu.memory_space<vmem>>, %arg2: memref<5x128xf32, #tpu.memory_space<vmem>>, %arg3: memref<8x128xf32, #tpu.memory_space<vmem>>) attributes {dimension_semantics = [#tpu.dimension_semantics<parallel>], iteration_bounds = array<i64: 1>, scalar_prefetch = 0 : i64, scratch_operands = 0 : i64, tpu.core_type = #tpu.core_type<tc>, window_params = [{transform_indices = @transform_0, window_bounds = array<i64: 8, 4>}, {pipeline_mode = #tpu.pipeline_mode<synchronous>, transform_indices = @transform_1, window_bounds = array<i64: 5, 128>}, {transform_indices = @transform_2, window_bounds = array<i64: 8, 128>}]} {
    %c0 = arith.constant 0 : index
    %c0_0 = arith.constant 0 : index
    %0 = vector.load %arg1[%c0, %c0_0] : memref<8x4xf32, #tpu.memory_space<vmem>>, vector<8x4xf32>
    %c0_1 = arith.constant 0 : index
    %c0_2 = arith.constant 0 : index
    %1 = vector.load %arg2[%c0_1, %c0_2] : memref<5x128xf32, #tpu.memory_space<vmem>>, vector<5x128xf32>
    %2 = vector.extract_strided_slice %1 {offsets = [4, 0], sizes = [1, 128], strides = [1, 1]} : vector<5x128xf32> to vector<1x128xf32>
    %3 = vector.extract_strided_slice %0 {offsets = [0, 0], sizes = [8, 1], strides = [1, 1]} : vector<8x4xf32> to vector<8x1xf32>
    %4 = vector.extract_strided_slice %1 {offsets = [0, 0], sizes = [1, 128], strides = [1, 1]} : vector<5x128xf32> to vector<1x128xf32>
    %5 = vector.broadcast %3 : vector<8x1xf32> to vector<8x128xf32>
    %6 = vector.broadcast %4 : vector<1x128xf32> to vector<8x128xf32>
    %7 = arith.mulf %5, %6 : vector<8x128xf32>
    %8 = vector.broadcast %2 : vector<1x128xf32> to vector<8x128xf32>
    %9 = arith.addf %8, %7 : vector<8x128xf32>
    %10 = vector.extract_strided_slice %0 {offsets = [0, 1], sizes = [8, 1], strides = [1, 1]} : vector<8x4xf32> to vector<8x1xf32>
    %11 = vector.extract_strided_slice %1 {offsets = [1, 0], sizes = [1, 128], strides = [1, 1]} : vector<5x128xf32> to vector<1x128xf32>
    %12 = vector.broadcast %10 : vector<8x1xf32> to vector<8x128xf32>
    %13 = vector.broadcast %11 : vector<1x128xf32> to vector<8x128xf32>
    %14 = arith.mulf %12, %13 : vector<8x128xf32>
    %15 = arith.addf %9, %14 : vector<8x128xf32>
    %16 = vector.extract_strided_slice %0 {offsets = [0, 2], sizes = [8, 1], strides = [1, 1]} : vector<8x4xf32> to vector<8x1xf32>
    %17 = vector.extract_strided_slice %1 {offsets = [2, 0], sizes = [1, 128], strides = [1, 1]} : vector<5x128xf32> to vector<1x128xf32>
    %18 = vector.broadcast %16 : vector<8x1xf32> to vector<8x128xf32>
    %19 = vector.broadcast %17 : vector<1x128xf32> to vector<8x128xf32>
    %20 = arith.mulf %18, %19 : vector<8x128xf32>
    %21 = arith.addf %15, %20 : vector<8x128xf32>
    %22 = vector.extract_strided_slice %0 {offsets = [0, 3], sizes = [8, 1], strides = [1, 1]} : vector<8x4xf32> to vector<8x1xf32>
    %23 = vector.extract_strided_slice %1 {offsets = [3, 0], sizes = [1, 128], strides = [1, 1]} : vector<5x128xf32> to vector<1x128xf32>
    %24 = vector.broadcast %22 : vector<8x1xf32> to vector<8x128xf32>
    %25 = vector.broadcast %23 : vector<1x128xf32> to vector<8x128xf32>
    %26 = arith.mulf %24, %25 : vector<8x128xf32>
    %27 = arith.addf %21, %26 : vector<8x128xf32>
    %28 = math.sin %27 : vector<8x128xf32>
    %c0_3 = arith.constant 0 : index
    %c0_4 = arith.constant 0 : index
    %29 = vector.load %arg3[%c0_3, %c0_4] : memref<8x128xf32, #tpu.memory_space<vmem>>, vector<8x128xf32>
    tpu.vector_store %arg3[%c0_3, %c0_4], %28 {strides = array<i32>} : memref<8x128xf32, #tpu.memory_space<vmem>>, vector<8x128xf32>,
    return
  }
  func.func @transform_0(%arg0: i32) -> (i32, i32) {
    %c0_i32 = arith.constant 0 : i32
    %c0_i32_0 = arith.constant 0 : i32
    return %arg0, %c0_i32 : i32, i32
  }
  func.func @transform_1(%arg0: i32) -> (i32, i32) {
    %c0_i32 = arith.constant 0 : i32
    %c0_i32_0 = arith.constant 0 : i32
    %c0_i32_1 = arith.constant 0 : i32
    return %c0_i32, %c0_i32_0 : i32, i32
  }
  func.func @transform_2(%arg0: i32) -> (i32, i32) {
    %c0_i32 = arith.constant 0 : i32
    %c0_i32_0 = arith.constant 0 : i32
    return %arg0, %c0_i32 : i32, i32
  }
}

</mosaic_0001>

<bundles_post_ra>
// kernel: tpu_custom_call.1
= control target key start
LH: loop header
LB: loop body
LE: loop exit
PB: predicated region body
PF: predicated region fallthrough
CT: control target
= control target key end

     0   :  { %v230_v1 = vmov 0   ;;  %v231_v2 = vmov 2   ;;  %s295_s0 = inlined_call_operand.vmem [shape: f32[8,4], index: 0, kind: input, shape index: {}]   ;;  %s296_s1 = inlined_call_operand.vmem [shape: f32[5,128], index: 1, kind: input, shape index: {}]   ;;  %s297_s2 = inlined_call_operand.hbm [shape: f32[8,128], index: 2, kind: output, shape index: {}]  }
   0x1   :  { %v12_v0 = vld [vmem:[%s295_s0] sm:$0xff]  ;;  %197 = vset.pattern.permute.xlu0 %v230_v1  ;;  %199 = vset.pattern.permute.xlu1 %v231_v2 }
   0x2   :  { %7 = vsyncpa [#allocation3], 0  ;;  %16 = vperm.xlu0 %197, %v12_v0   ;;  %40 = vperm.xlu1 %199, %v12_v0   ;;  %v232_v3 = vmov 1   ;;  %v233_v4 = vmov 3   ;;  %v19_v5 = vlaneseq  ;;  %v13_v8 = vld [vmem:[%s296_s1] sm:$0x1f] }
   0x3   :  { %v234_v41 = vmov 2102212464   ;;  %v235_v43 = vmov 920167782   ;;  %v236_v47 = vmov 1326507024  }
   0x4   :  { %v20_v6 = vshrl.u32 %v19_v5, 7  ;;  %v237_v49 = vmov 683565275   ;;  %v238_v51 = vmov 2475754826   ;;  %s240_s0 = smov [#allocation2]  }
   0x5   :  { %v239_v54 = vmov 2131351028   ;;  %s170_s1 = sshll.u32 %s240_s0, 4  ;;  %s171_s1 = int_to_ptr.vmem [resolvable:$true] %s170_s1 }
   0x6   :  { %198 = vset.pattern.permute.xlu0 %v232_v3  ;;  %200 = vset.pattern.permute.xlu1 %v233_v4  ;;  %v21_v7 = vsub.s32 0, %v20_v6  ;;  %v26_v10 = vsub.s32 4, %v20_v6  ;;  %v35_v11 = vsub.s32 1, %v20_v6  ;;  %v45_v13 = vsub.s32 2, %v20_v6  ;;  %s206_s13 = scalar_lea.vmem %s171_s1, 128  ;;  %p211_p1 = scmp.lt.s32.totalorder %s171_s1, %s171_s1 }
   0x7   :  { %30 = vperm.xlu0 %198, %v12_v0   ;;  %50 = vperm.xlu1 %200, %v12_v0   ;;  %v55_v15 = vsub.s32 3, %v20_v6  ;;  %p207_p0 = scmp.ne.s32.totalorder %s171_s1, %s206_s13  ;;  %p212_p2 = scmp.lt.s32.totalorder %s206_s13, %s206_s13 }
   0x8   :  { %v22_v9 = vrot.slane %v13_v8, %v21_v7  ;;  %v27_v16 = vrot.slane %v13_v8, %v26_v10  ;;  %v36_v18 = vrot.slane %v13_v8, %v35_v11  ;;  %v46_v19 = vrot.slane %v13_v8, %v45_v13 }
   0x9   :  { %v56_v20 = vrot.slane %v13_v8, %v55_v15  ;;  %p213_p3 = por %p212_p2, %p211_p1 }
   0xb   :  { %201 = vset.pattern.permute.xlu0 %v233_v4  ;;  %p214_p4 = pnand %p213_p3, %p207_p0 }
  0x81   :  { %v17_v12 = vpop.permute.xlu0 %16  ;;  %v41_v14 = vpop.permute.xlu1 %40 }
  0x82   :  { %v23_v17 = vmul.f32 %v22_v9, %v17_v12  ;;  %v47_v25 = vmul.f32 %v46_v19, %v41_v14 }
  0x84   :  { %v28_v23 = vadd.f32 %v27_v16, %v23_v17 }
  0x86   :  { %v31_v21 = vpop.permute.xlu0 %30  ;;  %v51_v22 = vpop.permute.xlu1 %50 }
  0x87   :  { %v37_v24 = vmul.f32 %v36_v18, %v31_v21  ;;  %v57_v27 = vmul.f32 %v56_v20, %v51_v22 }
  0x89   :  { %v38_v26 = vadd.f32 %v37_v24, %v28_v23 }
  0x8b   :  { %v48_v28 = vadd.f32 %v47_v25, %v38_v26 }
  0x8d   :  { %v262_v29 = vadd.f32 %v57_v27, %v48_v28 }
  0x8f   :  { %v62_v30 = vand.u32 2139095040, %v262_v29  ;;  %v59_v31 = vand.u32 2147483647, %v262_v29  ;;  %vm61_vm7 = vcmp.lt.s32.totalorder %v262_v29, 0  ;;  %vm151_vm12 = vweird.f32 %v262_v29 }
  0x91   :  { %v63_v32 = vshrl.u32 %v62_v30, 23  ;;  %v66_v34 = vand.u32 8388607, %v59_v31  ;;  %vm60_vm8 = vcmp.le.f32.partialorder %v59_v31, 0.7853982 }
  0x93   :  { %v178_v33 = vadd.s32 4294967169, %v63_v32  ;;  %v67_v37 = vor.u32 8388608, %v66_v34 }
  0x95   :  { %v69_v35 = vadd.s32 1, %v178_v33  ;;  %v107_v45 = vshll.u32 %v67_v37, 8 }
  0x97   :  { %vm70_vm0 = vcmp.gt.s32.totalorder %v69_v35, 0 }
  0x98   :  { %v71_v36 = vsel %vm70_vm0, %v69_v35, 0 }
  0x99   :  { %v73_v38 = vand.u32 31, %v71_v36  ;;  %v72_v39 = vshrl.u32 %v71_v36, 5 }
  0x9b   :  { %v74_v40 = vsub.s32 32, %v73_v38  ;;  %v85_v42 = vshll.u32 %v234_v41, %v73_v38  ;;  %v88_v44 = vshll.u32 %v235_v43, %v73_v38  ;;  %v76_v50 = vshll.u32 %v237_v49, %v73_v38 }
  0x9c   :  { %v79_v53 = vshll.u32 %v238_v51, %v73_v38  ;;  %v82_v56 = vshll.u32 %v239_v54, %v73_v38  ;;  %vm94_vm1 = vcmp.lt.s32.totalorder %v72_v39, 4  ;;  %vm91_vm2 = vcmp.lt.s32.totalorder %v72_v39, 1 }
  0x9d   :  { %v86_v46 = vshrl.u32 %v235_v43, %v74_v40  ;;  %v89_v48 = vshrl.u32 %v236_v47, %v74_v40  ;;  %v77_v52 = vshrl.u32 %v238_v51, %v74_v40  ;;  %v80_v55 = vshrl.u32 %v239_v54, %v74_v40 }
  0x9e   :  { %v83_v57 = vshrl.u32 %v234_v41, %v74_v40  ;;  %v75_v61 = vshrl.u32 %v237_v49, %v74_v40  ;;  %vm92_vm3 = vcmp.lt.s32.totalorder %v72_v39, 2  ;;  %vm93_vm4 = vcmp.lt.s32.totalorder %v72_v39, 3 }
  0x9f   :  { %v87_v58 = vor.u32 %v86_v46, %v85_v42  ;;  %v90_v59 = vor.u32 %v89_v48, %v88_v44  ;;  %v78_v60 = vor.u32 %v77_v52, %v76_v50  ;;  %v81_v62 = vor.u32 %v80_v55, %v79_v53 }
  0xa0   :  { %v84_v63 = vor.u32 %v83_v57, %v82_v56 }
  0xa1   :  { %v100_v0 = vsel %vm94_vm1, %v87_v58, 920167782  ;;  %v104_v1 = vsel %vm94_vm1, %v90_v59, 1326507024  ;;  %v99_v3 = vsel %vm91_vm2, %v78_v60, %v81_v62  ;;  %v95_v6 = vsel %vm91_vm2, %v75_v61, %v78_v60 }
  0xa2   :  { %v96_v2 = vsel %vm94_vm1, %v84_v63, 2102212464  ;;  %v101_v4 = vsel %vm93_vm4, %v84_v63, %v100_v0  ;;  %v103_v5 = vsel %vm91_vm2, %v81_v62, %v84_v63  ;;  %v105_v9 = vsel %vm93_vm4, %v87_v58, %v104_v1 }
  0xa3   :  { %v97_v7 = vsel %vm93_vm4, %v81_v62, %v96_v2  ;;  %v102_v8 = vsel %vm92_vm3, %v99_v3, %v101_v4  ;;  %v106_v10 = vsel %vm92_vm3, %v103_v5, %v105_v9 }
  0xa4   :  { %v268_v11 = vmul.u32.u64.low %v107_v45, %v102_v8  ;;  %v269_v12 = vmul.u32.u64.high %v107_v45, %v102_v8, %v268_v11  ;;  %v271_v13 = vmul.u32.u64.low %v107_v45, %v106_v10  ;;  %v272_v14 = vmul.u32.u64.high %v107_v45, %v106_v10, %v271_v13 }
  0xa5   :  { %v98_v15 = vsel %vm92_vm3, %v95_v6, %v97_v7 }
  0xa6   :  { %v117_v16 = vadd.s32 1, %v269_v12  ;;  %v114_v17 = vmul.u32 %v107_v45, %v98_v15  ;;  %vm116_vm5 = vc.u32 %v272_v14, %v268_v11  ;;  %v115_v30 = vadd.s32 %v268_v11, %v272_v14 }
  0xa8   :  { %v118_v18 = vsel %vm116_vm5, %v117_v16, %v269_v12 }
  0xa9   :  { %v119_v19 = vadd.s32 %v118_v18, %v114_v17 }
  0xab   :  { %v120_v20 = vadd.s32 536870912, %v119_v19 }
  0xad   :  { %v121_v21 = vshrl.u32 %v120_v20, 30 }
  0xaf   :  { %v122_v22 = vshll.u32 %v121_v21, 30  ;;  %v145_v43 = vsub.s32 4, %v121_v21 }
  0xb1   :  { %v123_v23 = vsub.s32 %v119_v19, %v122_v22  ;;  %v146_v46 = vsel %vm61_vm7, %v145_v43, %v121_v21 }
  0xb2   :  { %v148_v48 = vsel %vm60_vm8, 0, %v146_v46 }
  0xb3   :  { %v125_v24 = vsub.s32 0, %v123_v23  ;;  %v152_v49 = vadd.s32 3, %v148_v48 }
  0xb5   :  { %v179_v25 = vmin.u32 %v125_v24, %v123_v23  ;;  %v153_v50 = vand.u32 3, %v152_v49 }
  0xb7   :  { %v127_v26 = vclz %v179_v25  ;;  %vm158_vm9 = vcmp.eq.s32.totalorder %v153_v50, 2  ;;  %vm155_vm10 = vcmp.eq.s32.totalorder %v153_v50, 0  ;;  %vm154_vm11 = vcmp.lt.s32.totalorder %v153_v50, 2 }
  0xb9   :  { %v180_v27 = vadd.s32 4294967294, %v127_v26 }
  0xbb   :  { %vm181_vm6 = vcmp.lt.s32.totalorder %v180_v27, 0 }
  0xbc   :  { %v130_v28 = vsel %vm181_vm6, 0, %v180_v27 }
  0xbd   :  { %v131_v32 = vsub.s32 32, %v130_v28  ;;  %v135_v33 = vsub.s32 4294967266, %v130_v28  ;;  %v132_v34 = vshll.u32 %v123_v23, %v130_v28 }
  0xbf   :  { %v133_v35 = vshrl.u32 %v115_v30, %v131_v32  ;;  %v136_v36 = vadd.s32 127, %v135_v33 }
  0xc1   :  { %v134_v37 = vor.u32 %v133_v35, %v132_v34  ;;  %v137_v38 = vshll.u32 %v136_v36, 23 }
  0xc3   :  { %v138_v39 = vor.u32 4788187, %v137_v38  ;;  %v141_v41 = vcvt.s32.f32 %v134_v37 }
  0xc5   :  { %v139_v40 = vand.u32 2147483647, %v138_v39 }
  0xc7   :  { %v142_v42 = vmul.f32 %v141_v41, %v139_v40 }
  0xc9   :  { %v143_v44 = vxor.u32 2147483648, %v142_v42 }
  0xcb   :  { %v144_v45 = vsel %vm61_vm7, %v143_v44, %v142_v42 }
  0xcc   :  { %v147_v47 = vsel %vm60_vm8, %v262_v29, %v144_v45 }
  0xcd   :  { %202 = vcosq.f32 %v147_v47 }
  0xce   :  { %204 = vsinq.f32 %v147_v47 }
  0xd7   :  { %v203_v51 = vpop.eup %202 }
  0xd8   :  { %v205_v52 = vpop.eup %204  ;;  %v159_v53 = vxor.u32 2147483648, %v203_v51 }
  0xd9   :  { %v156_v54 = vxor.u32 2147483648, %v205_v52 }
  0xda   :  { %v160_v55 = vsel %vm158_vm9, %v159_v53, %v205_v52 }
  0xdb   :  { %v157_v31 = vsel %vm155_vm10, %v203_v51, %v156_v54 }
  0xdc   :  { %v161_v56 = vsel %vm154_vm11, %v157_v31, %v160_v55 }
  0xdd   :  { %v162_v57 = vsel %vm151_vm12, nan, %v161_v56 }
  0xde   :  { %163 = vst [vmem:[#allocation2] sm:$0xff] %v162_v57 }
  0xdf   :  { %217 = shalt.err (!%p214_p4)
}
  0xe0   :  { %s218_s16 = scalar_lea.hbm %s297_s2, 128 }
  0xe1   :  { %p219_p5 = scmp.ne.s32.totalorder %s297_s2, %s218_s16  ;;  %p222_p6 = scmp.lt.u32.totalorder %s218_s16, %s297_s2 }
  0xe3   :  { %p224_p7 = pnand %p222_p6, %p219_p5 }
  0xe5   :  { %227 = shalt.err (!%p224_p7)
}
  0xe6   :  { %173 = dma.vmem_to_hbm [thread:$0]  %s171_s1, 128, %s297_s2, [#allocation3]  }
  0xe7   :  { %228 = dma.done.wait [#allocation3], 128  }
  0xe8   :  { %229 = vsyncadd [#allocation3], 4294967168 }
  0xe9   :  { %177 = vsyncpa [#allocation3], 1 }

</bundles_post_ra>
